<compile_context>
chip_gen: v6e
topology: v6e:2x2x1
jax: 0.10.0
libtpu: 0.0.40
codegen_flags: <defaults>
</compile_context>

<pallas_src>
import functools

import jax
import jax.numpy as jnp
from jax.experimental import pallas as pl
from jax.experimental.pallas import tpu as pltpu

_EPS = 1e-6  # torch.nn.functional.pairwise_distance default eps


def _quadruplet_kernel(a_ref, p_ref, n1_ref, n2_ref,        # inputs  (TB, D)
                       loss_ref, acc_ref,                    # outputs (1, 1) views
                       s1_ref, s2_ref, hit_ref,              # VMEM scratch (1, 1)
                       *, margin1, margin2, batch, tile_b,
                       tiles_per_core, needs_mask):
    c = pl.program_id(0)   # "core" split axis (parallel)
    i = pl.program_id(1)   # batch-tile axis (reduction, arbitrary)

    @pl.when(i == 0)
    def _init():
        s1_ref[...] = jnp.zeros_like(s1_ref)
        s2_ref[...] = jnp.zeros_like(s2_ref)
        hit_ref[...] = jnp.zeros_like(hit_ref)

    a = a_ref[...]
    p = p_ref[...]
    n1 = n1_ref[...]
    n2 = n2_ref[...]
    if a.dtype != jnp.float32:   # only insert casts when actually needed
        a = a.astype(jnp.float32)
        p = p.astype(jnp.float32)
        n1 = n1.astype(jnp.float32)
        n2 = n2.astype(jnp.float32)

    # squared pairwise distances per row, keepdim -> (TB, 1)
    da = a - p + _EPS
    db = a - n1 + _EPS
    dc = n1 - n2 + _EPS
    d1_sq = jnp.sum(da * da, axis=-1, keepdims=True)
    d2_sq = jnp.sum(db * db, axis=-1, keepdims=True)
    d3_sq = jnp.sum(dc * dc, axis=-1, keepdims=True)

    term1 = jnp.maximum(d1_sq - d2_sq + margin1, 0.0)
    term2 = jnp.maximum(d1_sq - d3_sq + margin2, 0.0)
    # sqrt is monotonic on >=0, so compare squared distances directly (no EUP).
    hits = jnp.logical_and(d1_sq < d2_sq, d1_sq < d3_sq).astype(jnp.float32)

    if needs_mask:
        # Rows past `batch` (tail block read without padding, or fully
        # out-of-range logical tiles on the clamped core-split) are undefined:
        # use a NaN-safe select, not a multiplicative mask.
        tile_idx = c * tiles_per_core + i          # logical (unclamped) tile
        row = tile_idx * tile_b + jax.lax.broadcasted_iota(
            jnp.int32, term1.shape, 0)
        valid = row < batch
        term1 = jnp.where(valid, term1, 0.0)
        term2 = jnp.where(valid, term2, 0.0)
        hits = jnp.where(valid, hits, 0.0)

    s1_ref[...] += jnp.sum(term1, keepdims=True)
    s2_ref[...] += jnp.sum(term2, keepdims=True)
    hit_ref[...] += jnp.sum(hits, keepdims=True)

    @pl.when(i == pl.num_programs(1) - 1)
    def _finalize():
        inv_b = 1.0 / batch                  # Python float, folded at trace time
        loss_ref[...] = (s1_ref[...] + s2_ref[...]) * inv_b
        acc_ref[...] = hit_ref[...] * inv_b


def _vmem_limit_bytes():
    """Generation-aware scoped-VMEM limit (don't port a 128 MiB budget to v7x)."""
    try:
        phys = int(pltpu.get_tpu_info().vmem_capacity_bytes)
    except Exception:
        phys = 64 * 1024 * 1024              # conservative fallback
    if phys >= 100 * 1024 * 1024:            # v5e / v6e class: 128 MiB physical
        return 64 * 1024 * 1024
    return 32 * 1024 * 1024                  # v7x class: 64 MiB physical


def _choose_tile_b(batch, dim, itemsize, vmem_limit):
    """Batch tile sized by bytes (HBM-burst efficiency), not by a row count."""
    pack = max(8, 32 // itemsize)            # sublane packing: 8 f32 / 16 bf16 / 32 i8
    big = vmem_limit >= 64 * 1024 * 1024
    per_block = (2 if big else 1) * 1024 * 1024   # bytes per input block
    # Row cap bounds the (tile_b, 1) lane-padded intermediates (512 B/row f32).
    row_cap = 8192 if big else 4096
    tb = per_block // (dim * itemsize)
    tb = min(tb, row_cap)
    tb = max(pack, tb - tb % pack)
    if tb >= batch:
        return batch                         # single full-extent block (always legal)
    return tb


def quadruplet_loss(anchor, positive, negative1, negative2,
                    margin1=2.0, margin2=1.0, tile_b=None):
    """Returns (loss, acc) as scalar float32 values."""
    batch, dim = anchor.shape
    itemsize = jnp.dtype(anchor.dtype).itemsize
    vmem_limit = _vmem_limit_bytes()
    if tile_b is None:
        tile_b = _choose_tile_b(batch, dim, itemsize, vmem_limit)
    assert tile_b == batch or tile_b % 8 == 0, \
        "tile_b must be a multiple of 8 or equal to the batch size"

    num_tiles = -(-batch // tile_b)
    # Leading "parallel" axis: uses both TensorCores on v7x, free elsewhere.
    num_cores = 2 if num_tiles >= 2 else 1
    tiles_per_core = -(-num_tiles // num_cores)
    last_tile = num_tiles - 1
    # Mask needed iff the (possibly over-provisioned) grid does not exactly
    # cover the batch (ragged tail block and/or odd tile count on 2 cores).
    needs_mask = (num_cores * tiles_per_core * tile_b) != batch

    kernel = functools.partial(
        _quadruplet_kernel,
        margin1=float(margin1), margin2=float(margin2),
        batch=batch, tile_b=tile_b,
        tiles_per_core=tiles_per_core, needs_mask=needs_mask)

    def in_map(c, i):
        # Clamp so a core's overhang tile never issues an out-of-bounds DMA;
        # its (duplicated) contribution is zeroed by the in-kernel row mask.
        return (jnp.minimum(c * tiles_per_core + i, last_tile), 0)

    in_spec = pl.BlockSpec((tile_b, dim), in_map)
    # Per-core partial outputs; leading dim squeezed so the kernel sees (1, 1).
    out_spec = pl.BlockSpec((None, 1, 1), lambda c, i: (c, 0, 0))

    cost = pl.CostEstimate(
        flops=9 * batch * dim,
        transcendentals=0,
        bytes_accessed=4 * batch * dim * itemsize)

    loss_p, acc_p = pl.pallas_call(
        kernel,
        grid=(num_cores, tiles_per_core),
        in_specs=[in_spec, in_spec, in_spec, in_spec],
        out_specs=(out_spec, out_spec),
        out_shape=(
            jax.ShapeDtypeStruct((num_cores, 1, 1), jnp.float32),
            jax.ShapeDtypeStruct((num_cores, 1, 1), jnp.float32),
        ),
        scratch_shapes=[
            pltpu.VMEM((1, 1), jnp.float32),
            pltpu.VMEM((1, 1), jnp.float32),
            pltpu.VMEM((1, 1), jnp.float32),
        ],
        compiler_params=pltpu.CompilerParams(
            dimension_semantics=("parallel", "arbitrary"),
            vmem_limit_bytes=vmem_limit),
        cost_estimate=cost,
    )(anchor, positive, negative1, negative2)

    # Combine the per-core partials (already divided by the full batch).
    return jnp.sum(loss_p), jnp.sum(acc_p)


def _reference(anchor, positive, negative1, negative2, m1=2.0, m2=1.0):
    d1 = jnp.sqrt(jnp.sum((anchor - positive + _EPS) ** 2, -1, keepdims=True))
    d2 = jnp.sqrt(jnp.sum((anchor - negative1 + _EPS) ** 2, -1, keepdims=True))
    d3 = jnp.sqrt(jnp.sum((negative1 - negative2 + _EPS) ** 2, -1, keepdims=True))
    loss = (jnp.mean(jnp.maximum(d1 ** 2 - d2 ** 2 + m1, 0.0))
            + jnp.mean(jnp.maximum(d1 ** 2 - d3 ** 2 + m2, 0.0)))
    acc = jnp.sum(((d1 < d2) & (d1 < d3)).astype(jnp.float32)) / anchor.shape[0]
    return loss, acc


if __name__ == "__main__":
    # Case 1: small aligned batch (B=8, D=32) -> single full block, one core.
    k1, k2, k3, k4 = jax.random.split(jax.random.PRNGKey(0), 4)
    B, D = 8, 32
    anchor = jax.random.normal(k1, (B, D), dtype=jnp.float32)
    positive = anchor + 0.1 * jax.random.normal(k2, (B, D), dtype=jnp.float32)
    negative1 = jax.random.normal(k3, (B, D), dtype=jnp.float32)
    negative2 = jax.random.normal(k4, (B, D), dtype=jnp.float32)

    loss, acc = jax.jit(quadruplet_loss)(anchor, positive, negative1, negative2)
    jax.block_until_ready((loss, acc))
    ref_loss, ref_acc = _reference(anchor, positive, negative1, negative2)
    assert jnp.allclose(loss, ref_loss, rtol=1e-5, atol=1e-5), (loss, ref_loss)
    assert jnp.allclose(acc, ref_acc, rtol=1e-6, atol=1e-6), (acc, ref_acc)

    # Case 2: ragged batch (B=20) with a forced small tile -> exercises the
    # multi-tile grid, the two-way core split (with clamped overhang tile),
    # the accumulator init/finalize and the NaN-safe tail-row mask (no pad).
    k5, k6, k7, k8 = jax.random.split(jax.random.PRNGKey(0), 4)
    B2, D2 = 20, 32
    a2 = jax.random.normal(k5, (B2, D2), dtype=jnp.float32)
    p2 = a2 + 0.1 * jax.random.normal(k6, (B2, D2), dtype=jnp.float32)
    n1_2 = jax.random.normal(k7, (B2, D2), dtype=jnp.float32)
    n2_2 = jax.random.normal(k8, (B2, D2), dtype=jnp.float32)

    loss2, acc2 = jax.jit(
        functools.partial(quadruplet_loss, tile_b=8))(a2, p2, n1_2, n2_2)
    jax.block_until_ready((loss2, acc2))
    ref_loss2, ref_acc2 = _reference(a2, p2, n1_2, n2_2)
    assert jnp.allclose(loss2, ref_loss2, rtol=1e-5, atol=1e-5), (loss2, ref_loss2)
    assert jnp.allclose(acc2, ref_acc2, rtol=1e-6, atol=1e-6), (acc2, ref_acc2)

    # Case 3: tiny batch (B=4 < 8) -> full-extent block smaller than a sublane
    # group (legal: block dims equal to the full array dims), no padding.
    k9, k10, k11, k12 = jax.random.split(jax.random.PRNGKey(0), 4)
    B3, D3 = 4, 32
    a3 = jax.random.normal(k9, (B3, D3), dtype=jnp.float32)
    p3 = a3 + 0.1 * jax.random.normal(k10, (B3, D3), dtype=jnp.float32)
    n1_3 = jax.random.normal(k11, (B3, D3), dtype=jnp.float32)
    n2_3 = jax.random.normal(k12, (B3, D3), dtype=jnp.float32)

    loss3, acc3 = jax.jit(quadruplet_loss)(a3, p3, n1_3, n2_3)
    jax.block_until_ready((loss3, acc3))
    ref_loss3, ref_acc3 = _reference(a3, p3, n1_3, n2_3)
    assert jnp.allclose(loss3, ref_loss3, rtol=1e-5, atol=1e-5), (loss3, ref_loss3)
    assert jnp.allclose(acc3, ref_acc3, rtol=1e-6, atol=1e-6), (acc3, ref_acc3)

    print("KERNEL_OK")
</pallas_src>

<mosaic_0001>
module attributes {stable_mosaic.version = 11 : i64} {
  func.func @_quadruplet_kernel(%arg0: i32, %arg1: i32, %arg2: memref<8x32xf32, #tpu.memory_space<vmem>>, %arg3: memref<8x32xf32, #tpu.memory_space<vmem>>, %arg4: memref<8x32xf32, #tpu.memory_space<vmem>>, %arg5: memref<8x32xf32, #tpu.memory_space<vmem>>, %arg6: memref<1x1x1xf32, #tpu.memory_space<vmem>>, %arg7: memref<1x1x1xf32, #tpu.memory_space<vmem>>, %arg8: memref<1x1xf32, #tpu.memory_space<vmem>>, %arg9: memref<1x1xf32, #tpu.memory_space<vmem>>, %arg10: memref<1x1xf32, #tpu.memory_space<vmem>>) attributes {dimension_semantics = [#tpu.dimension_semantics<parallel>, #tpu.dimension_semantics<arbitrary>], iteration_bounds = array<i64: 1, 1>, scalar_prefetch = 0 : i64, scratch_operands = 3 : i64, tpu.core_type = #tpu.core_type<tc>, window_params = [{transform_indices = @transform_0, window_bounds = array<i64: 8, 32>}, {transform_indices = @transform_1, window_bounds = array<i64: 8, 32>}, {transform_indices = @transform_2, window_bounds = array<i64: 8, 32>}, {transform_indices = @transform_3, window_bounds = array<i64: 8, 32>}, {transform_indices = @transform_4, window_bounds = array<i64: 1, 1, 1>}, {transform_indices = @transform_5, window_bounds = array<i64: 1, 1, 1>}]} {
    %c0_i32 = arith.constant 0 : i32
    %0 = arith.cmpi eq, %arg1, %c0_i32 : i32
    %1 = arith.extui %0 : i1 to i32
    %c0_i32_0 = arith.constant 0 : i32
    %2 = arith.cmpi ne, %1, %c0_i32_0 : i32
    scf.if %2 {
      %cst_34 = arith.constant 0.000000e+00 : f32
      %67 = vector.broadcast %cst_34 : f32 to vector<1x1xf32>
      %c0_35 = arith.constant 0 : index
      %c0_36 = arith.constant 0 : index
      %68 = vector.load %arg8[%c0_35, %c0_36] : memref<1x1xf32, #tpu.memory_space<vmem>>, vector<1x1xf32>
      tpu.vector_store %arg8[%c0_35, %c0_36], %67 {strides = array<i32>} : memref<1x1xf32, #tpu.memory_space<vmem>>, vector<1x1xf32>,
      %cst_37 = arith.constant 0.000000e+00 : f32
      %69 = vector.broadcast %cst_37 : f32 to vector<1x1xf32>
      %c0_38 = arith.constant 0 : index
      %c0_39 = arith.constant 0 : index
      %70 = vector.load %arg9[%c0_38, %c0_39] : memref<1x1xf32, #tpu.memory_space<vmem>>, vector<1x1xf32>
      tpu.vector_store %arg9[%c0_38, %c0_39], %69 {strides = array<i32>} : memref<1x1xf32, #tpu.memory_space<vmem>>, vector<1x1xf32>,
      %cst_40 = arith.constant 0.000000e+00 : f32
      %71 = vector.broadcast %cst_40 : f32 to vector<1x1xf32>
      %c0_41 = arith.constant 0 : index
      %c0_42 = arith.constant 0 : index
      %72 = vector.load %arg10[%c0_41, %c0_42] : memref<1x1xf32, #tpu.memory_space<vmem>>, vector<1x1xf32>
      tpu.vector_store %arg10[%c0_41, %c0_42], %71 {strides = array<i32>} : memref<1x1xf32, #tpu.memory_space<vmem>>, vector<1x1xf32>,
    } else {
    }
    %c0 = arith.constant 0 : index
    %c0_1 = arith.constant 0 : index
    %3 = vector.load %arg2[%c0, %c0_1] : memref<8x32xf32, #tpu.memory_space<vmem>>, vector<8x32xf32>
    %c0_2 = arith.constant 0 : index
    %c0_3 = arith.constant 0 : index
    %4 = vector.load %arg3[%c0_2, %c0_3] : memref<8x32xf32, #tpu.memory_space<vmem>>, vector<8x32xf32>
    %c0_4 = arith.constant 0 : index
    %c0_5 = arith.constant 0 : index
    %5 = vector.load %arg4[%c0_4, %c0_5] : memref<8x32xf32, #tpu.memory_space<vmem>>, vector<8x32xf32>
    %c0_6 = arith.constant 0 : index
    %c0_7 = arith.constant 0 : index
    %6 = vector.load %arg5[%c0_6, %c0_7] : memref<8x32xf32, #tpu.memory_space<vmem>>, vector<8x32xf32>
    %7 = arith.subf %3, %4 : vector<8x32xf32>
    %cst = arith.constant 9.99999997E-7 : f32
    %8 = vector.broadcast %cst : f32 to vector<8x32xf32>
    %9 = arith.addf %7, %8 : vector<8x32xf32>
    %10 = arith.subf %3, %5 : vector<8x32xf32>
    %cst_8 = arith.constant 9.99999997E-7 : f32
    %11 = vector.broadcast %cst_8 : f32 to vector<8x32xf32>
    %12 = arith.addf %10, %11 : vector<8x32xf32>
    %13 = arith.subf %5, %6 : vector<8x32xf32>
    %cst_9 = arith.constant 9.99999997E-7 : f32
    %14 = vector.broadcast %cst_9 : f32 to vector<8x32xf32>
    %15 = arith.addf %13, %14 : vector<8x32xf32>
    %16 = arith.mulf %9, %9 : vector<8x32xf32>
    %cst_10 = arith.constant dense<0.000000e+00> : vector<8xf32>
    %17 = vector.multi_reduction <add>, %16, %cst_10 [1] : vector<8x32xf32> to vector<8xf32>
    %18 = vector.shape_cast %17 : vector<8xf32> to vector<8x1xf32>
    %19 = arith.mulf %12, %12 : vector<8x32xf32>
    %cst_11 = arith.constant dense<0.000000e+00> : vector<8xf32>
    %20 = vector.multi_reduction <add>, %19, %cst_11 [1] : vector<8x32xf32> to vector<8xf32>
    %21 = vector.shape_cast %20 : vector<8xf32> to vector<8x1xf32>
    %22 = arith.mulf %15, %15 : vector<8x32xf32>
    %cst_12 = arith.constant dense<0.000000e+00> : vector<8xf32>
    %23 = vector.multi_reduction <add>, %22, %cst_12 [1] : vector<8x32xf32> to vector<8xf32>
    %24 = vector.shape_cast %23 : vector<8xf32> to vector<8x1xf32>
    %25 = arith.subf %18, %21 : vector<8x1xf32>
    %cst_13 = arith.constant 2.000000e+00 : f32
    %26 = vector.broadcast %cst_13 : f32 to vector<8x1xf32>
    %27 = arith.addf %25, %26 : vector<8x1xf32>
    %cst_14 = arith.constant 0.000000e+00 : f32
    %28 = vector.broadcast %cst_14 : f32 to vector<8x1xf32>
    %29 = arith.maximumf %27, %28 : vector<8x1xf32>
    %30 = arith.subf %18, %24 : vector<8x1xf32>
    %cst_15 = arith.constant 1.000000e+00 : f32
    %31 = vector.broadcast %cst_15 : f32 to vector<8x1xf32>
    %32 = arith.addf %30, %31 : vector<8x1xf32>
    %cst_16 = arith.constant 0.000000e+00 : f32
    %33 = vector.broadcast %cst_16 : f32 to vector<8x1xf32>
    %34 = arith.maximumf %32, %33 : vector<8x1xf32>
    %35 = arith.cmpf olt, %18, %21 : vector<8x1xf32>
    %36 = arith.cmpf olt, %18, %24 : vector<8x1xf32>
    %37 = arith.andi %35, %36 : vector<8x1xi1>
    %38 = arith.extui %37 : vector<8x1xi1> to vector<8x1xi32>
    %39 = arith.sitofp %38 : vector<8x1xi32> to vector<8x1xf32>
    %c0_17 = arith.constant 0 : index
    %c0_18 = arith.constant 0 : index
    %40 = vector.load %arg8[%c0_17, %c0_18] : memref<1x1xf32, #tpu.memory_space<vmem>>, vector<1x1xf32>
    %41 = vector.shape_cast %29 : vector<8x1xf32> to vector<1x8x1xf32>
    %cst_19 = arith.constant dense<0.000000e+00> : vector<1xf32>
    %42 = vector.multi_reduction <add>, %41, %cst_19 [1, 2] : vector<1x8x1xf32> to vector<1xf32>
    %43 = vector.shape_cast %42 : vector<1xf32> to vector<1x1x1xf32>
    %44 = vector.extract %43[0, 0, 0] : f32 from vector<1x1x1xf32>
    %45 = vector.broadcast %44 : f32 to vector<1x1xf32>
    %46 = arith.addf %40, %45 : vector<1x1xf32>
    %c0_20 = arith.constant 0 : index
    %c0_21 = arith.constant 0 : index
    %47 = vector.load %arg8[%c0_20, %c0_21] : memref<1x1xf32, #tpu.memory_space<vmem>>, vector<1x1xf32>
    tpu.vector_store %arg8[%c0_20, %c0_21], %46 {strides = array<i32>} : memref<1x1xf32, #tpu.memory_space<vmem>>, vector<1x1xf32>,
    %c0_22 = arith.constant 0 : index
    %c0_23 = arith.constant 0 : index
    %48 = vector.load %arg9[%c0_22, %c0_23] : memref<1x1xf32, #tpu.memory_space<vmem>>, vector<1x1xf32>
    %49 = vector.shape_cast %34 : vector<8x1xf32> to vector<1x8x1xf32>
    %cst_24 = arith.constant dense<0.000000e+00> : vector<1xf32>
    %50 = vector.multi_reduction <add>, %49, %cst_24 [1, 2] : vector<1x8x1xf32> to vector<1xf32>
    %51 = vector.shape_cast %50 : vector<1xf32> to vector<1x1x1xf32>
    %52 = vector.extract %51[0, 0, 0] : f32 from vector<1x1x1xf32>
    %53 = vector.broadcast %52 : f32 to vector<1x1xf32>
    %54 = arith.addf %48, %53 : vector<1x1xf32>
    %c0_25 = arith.constant 0 : index
    %c0_26 = arith.constant 0 : index
    %55 = vector.load %arg9[%c0_25, %c0_26] : memref<1x1xf32, #tpu.memory_space<vmem>>, vector<1x1xf32>
    tpu.vector_store %arg9[%c0_25, %c0_26], %54 {strides = array<i32>} : memref<1x1xf32, #tpu.memory_space<vmem>>, vector<1x1xf32>,
    %c0_27 = arith.constant 0 : index
    %c0_28 = arith.constant 0 : index
    %56 = vector.load %arg10[%c0_27, %c0_28] : memref<1x1xf32, #tpu.memory_space<vmem>>, vector<1x1xf32>
    %57 = vector.shape_cast %39 : vector<8x1xf32> to vector<1x8x1xf32>
    %cst_29 = arith.constant dense<0.000000e+00> : vector<1xf32>
    %58 = vector.multi_reduction <add>, %57, %cst_29 [1, 2] : vector<1x8x1xf32> to vector<1xf32>
    %59 = vector.shape_cast %58 : vector<1xf32> to vector<1x1x1xf32>
    %60 = vector.extract %59[0, 0, 0] : f32 from vector<1x1x1xf32>
    %61 = vector.broadcast %60 : f32 to vector<1x1xf32>
    %62 = arith.addf %56, %61 : vector<1x1xf32>
    %c0_30 = arith.constant 0 : index
    %c0_31 = arith.constant 0 : index
    %63 = vector.load %arg10[%c0_30, %c0_31] : memref<1x1xf32, #tpu.memory_space<vmem>>, vector<1x1xf32>
    tpu.vector_store %arg10[%c0_30, %c0_31], %62 {strides = array<i32>} : memref<1x1xf32, #tpu.memory_space<vmem>>, vector<1x1xf32>,
    %c0_i32_32 = arith.constant 0 : i32
    %64 = arith.cmpi eq, %arg1, %c0_i32_32 : i32
    %65 = arith.extui %64 : i1 to i32
    %c0_i32_33 = arith.constant 0 : i32
    %66 = arith.cmpi ne, %65, %c0_i32_33 : i32
    scf.if %66 {
      %c0_34 = arith.constant 0 : index
      %c0_35 = arith.constant 0 : index
      %67 = vector.load %arg8[%c0_34, %c0_35] : memref<1x1xf32, #tpu.memory_space<vmem>>, vector<1x1xf32>
      %c0_36 = arith.constant 0 : index
      %c0_37 = arith.constant 0 : index
      %68 = vector.load %arg9[%c0_36, %c0_37] : memref<1x1xf32, #tpu.memory_space<vmem>>, vector<1x1xf32>
      %69 = arith.addf %67, %68 : vector<1x1xf32>
      %cst_38 = arith.constant 1.250000e-01 : f32
      %70 = vector.broadcast %cst_38 : f32 to vector<1x1xf32>
      %71 = arith.mulf %69, %70 : vector<1x1xf32>
      %c0_39 = arith.constant 0 : index
      %c0_40 = arith.constant 0 : index
      %c0_41 = arith.constant 0 : index
      %72 = vector.load %arg6[%c0_39, %c0_40, %c0_41] : memref<1x1x1xf32, #tpu.memory_space<vmem>>, vector<1x1x1xf32>
      %73 = vector.shape_cast %72 : vector<1x1x1xf32> to vector<1x1xf32>
      %74 = vector.shape_cast %71 : vector<1x1xf32> to vector<1x1x1xf32>
      tpu.vector_store %arg6[%c0_39, %c0_40, %c0_41], %74 {strides = array<i32>} : memref<1x1x1xf32, #tpu.memory_space<vmem>>, vector<1x1x1xf32>,
      %c0_42 = arith.constant 0 : index
      %c0_43 = arith.constant 0 : index
      %75 = vector.load %arg10[%c0_42, %c0_43] : memref<1x1xf32, #tpu.memory_space<vmem>>, vector<1x1xf32>
      %cst_44 = arith.constant 1.250000e-01 : f32
      %76 = vector.broadcast %cst_44 : f32 to vector<1x1xf32>
      %77 = arith.mulf %75, %76 : vector<1x1xf32>
      %c0_45 = arith.constant 0 : index
      %c0_46 = arith.constant 0 : index
      %c0_47 = arith.constant 0 : index
      %78 = vector.load %arg7[%c0_45, %c0_46, %c0_47] : memref<1x1x1xf32, #tpu.memory_space<vmem>>, vector<1x1x1xf32>
      %79 = vector.shape_cast %78 : vector<1x1x1xf32> to vector<1x1xf32>
      %80 = vector.shape_cast %77 : vector<1x1xf32> to vector<1x1x1xf32>
      tpu.vector_store %arg7[%c0_45, %c0_46, %c0_47], %80 {strides = array<i32>} : memref<1x1x1xf32, #tpu.memory_space<vmem>>, vector<1x1x1xf32>,
    } else {
    }
    return
  }
  func.func @transform_0(%arg0: i32, %arg1: i32) -> (i32, i32) {
    %c1_i32 = arith.constant 1 : i32
    %0 = arith.muli %arg0, %c1_i32 : i32
    %1 = arith.addi %0, %arg1 : i32
    %c0_i32 = arith.constant 0 : i32
    %2 = arith.minsi %1, %c0_i32 : i32
    %c0_i32_0 = arith.constant 0 : i32
    %c0_i32_1 = arith.constant 0 : i32
    return %2, %c0_i32_0 : i32, i32
  }
  func.func @transform_1(%arg0: i32, %arg1: i32) -> (i32, i32) {
    %c1_i32 = arith.constant 1 : i32
    %0 = arith.muli %arg0, %c1_i32 : i32
    %1 = arith.addi %0, %arg1 : i32
    %c0_i32 = arith.constant 0 : i32
    %2 = arith.minsi %1, %c0_i32 : i32
    %c0_i32_0 = arith.constant 0 : i32
    %c0_i32_1 = arith.constant 0 : i32
    return %2, %c0_i32_0 : i32, i32
  }
  func.func @transform_2(%arg0: i32, %arg1: i32) -> (i32, i32) {
    %c1_i32 = arith.constant 1 : i32
    %0 = arith.muli %arg0, %c1_i32 : i32
    %1 = arith.addi %0, %arg1 : i32
    %c0_i32 = arith.constant 0 : i32
    %2 = arith.minsi %1, %c0_i32 : i32
    %c0_i32_0 = arith.constant 0 : i32
    %c0_i32_1 = arith.constant 0 : i32
    return %2, %c0_i32_0 : i32, i32
  }
  func.func @transform_3(%arg0: i32, %arg1: i32) -> (i32, i32) {
    %c1_i32 = arith.constant 1 : i32
    %0 = arith.muli %arg0, %c1_i32 : i32
    %1 = arith.addi %0, %arg1 : i32
    %c0_i32 = arith.constant 0 : i32
    %2 = arith.minsi %1, %c0_i32 : i32
    %c0_i32_0 = arith.constant 0 : i32
    %c0_i32_1 = arith.constant 0 : i32
    return %2, %c0_i32_0 : i32, i32
  }
  func.func @transform_4(%arg0: i32, %arg1: i32) -> (i32, i32, i32) {
    %c0_i32 = arith.constant 0 : i32
    %c0_i32_0 = arith.constant 0 : i32
    %c0_i32_1 = arith.constant 0 : i32
    return %arg0, %c0_i32, %c0_i32_0 : i32, i32, i32
  }
  func.func @transform_5(%arg0: i32, %arg1: i32) -> (i32, i32, i32) {
    %c0_i32 = arith.constant 0 : i32
    %c0_i32_0 = arith.constant 0 : i32
    %c0_i32_1 = arith.constant 0 : i32
    return %arg0, %c0_i32, %c0_i32_0 : i32, i32, i32
  }
}

</mosaic_0001>

<bundles_post_ra>
// kernel: quadruplet_loss.1
= control target key start
LH: loop header
LB: loop body
LE: loop exit
PB: predicated region body
PF: predicated region fallthrough
CT: control target
= control target key end

     0   :  { %11 = vsyncpa [#allocation6], 0  ;;  %s443_s0 = inlined_call_operand.hbm [shape: f32[8,32], index: 0, kind: input, shape index: {}]   ;;  %s444_s1 = inlined_call_operand.hbm [shape: f32[8,32], index: 1, kind: input, shape index: {}]   ;;  %s445_s2 = inlined_call_operand.hbm [shape: f32[8,32], index: 2, kind: input, shape index: {}]   ;;  %s446_s3 = inlined_call_operand.hbm [shape: f32[8,32], index: 3, kind: input, shape index: {}]   ;;  %s447_s4 = inlined_call_operand.hbm [shape: f32[1,1,1], index: 4, kind: output, shape index: {0}]   ;;  %s448_s5 = inlined_call_operand.hbm [shape: f32[1,1,1], index: 5, kind: output, shape index: {1}]  }
   0x1   :  { %12 = vsyncpa [#allocation9], 0 }
   0x2   :  { %13 = vsyncpa [#allocation12], 0 }
   0x3   :  { %14 = vsyncpa [#allocation7], 0 }
   0x4   :  { %15 = vsyncpa [#allocation15], 0  ;;  %s380_s18 = smov [#allocation8]   ;;  %s381_s20 = smov [#allocation5]  }
   0x5   :  { %s42_s19 = sshll.u32 %s380_s18, 4  ;;  %s27_s21 = sshll.u32 %s381_s20, 4  ;;  %s43_s19 = int_to_ptr.vmem [resolvable:$true] %s42_s19  ;;  %s28_s21 = int_to_ptr.vmem [resolvable:$true] %s27_s21 }
   0x6   :  { %s258_s22 = scalar_lea.vmem %s43_s19, 128  ;;  %p263_p1 = scmp.lt.s32.totalorder %s43_s19, %s43_s19 }
   0x7   :  { %p259_p0 = scmp.ne.s32.totalorder %s43_s19, %s258_s22  ;;  %p264_p2 = scmp.lt.s32.totalorder %s258_s22, %s258_s22 }
   0x9   :  { %p265_p3 = por %p264_p2, %p263_p1 }
   0xb   :  { %p266_p4 = pnand %p265_p3, %p259_p0 }
   0xd   :  { %269 = shalt.err (!%p266_p4)
}
   0xe   :  { %45 = dma.hbm_to_vmem [thread:$0]  %s444_s1, 128, %s43_s19, [#allocation9]  }
   0xf   :  { %s278_s25 = scalar_lea.vmem %s28_s21, 128  ;;  %p283_p6 = scmp.lt.s32.totalorder %s28_s21, %s28_s21 }
  0x10   :  { %p279_p5 = scmp.ne.s32.totalorder %s28_s21, %s278_s25  ;;  %p284_p7 = scmp.lt.s32.totalorder %s278_s25, %s278_s25 }
  0x12   :  { %p285_p8 = por %p284_p7, %p283_p6 }
  0x14   :  { %p286_p9 = pnand %p285_p8, %p279_p5 }
  0x16   :  { %289 = shalt.err (!%p286_p9)
}
  0x17   :  { %30 = dma.hbm_to_vmem [thread:$0]  %s443_s0, 128, %s28_s21, [#allocation6]  }
  0x18   :  { %s382_s28 = smov [#allocation10]   ;;  %s383_s30 = smov [#allocation11]  }
  0x19   :  { %s57_s29 = sshll.u32 %s382_s28, 4  ;;  %s72_s6 = sshll.u32 %s383_s30, 4  ;;  %s58_s29 = int_to_ptr.vmem [resolvable:$true] %s57_s29  ;;  %s73_s6 = int_to_ptr.vmem [resolvable:$true] %s72_s6 }
  0x1a   :  { %s298_s7 = scalar_lea.vmem %s58_s29, 128  ;;  %p303_p11 = scmp.lt.s32.totalorder %s58_s29, %s58_s29 }
  0x1b   :  { %p299_p10 = scmp.ne.s32.totalorder %s58_s29, %s298_s7  ;;  %p304_p12 = scmp.lt.s32.totalorder %s298_s7, %s298_s7 }
  0x1d   :  { %p305_p13 = por %p304_p12, %p303_p11 }
  0x1f   :  { %p306_p0 = pnand %p305_p13, %p299_p10 }
  0x21   :  { %309 = shalt.err (!%p306_p0)
}
  0x22   :  { %60 = dma.hbm_to_vmem [thread:$0]  %s445_s2, 128, %s58_s29, [#allocation9]  }
  0x23   :  { %s318_s9 = scalar_lea.vmem %s73_s6, 128  ;;  %p323_p2 = scmp.lt.s32.totalorder %s73_s6, %s73_s6 }
  0x24   :  { %p319_p1 = scmp.ne.s32.totalorder %s73_s6, %s318_s9  ;;  %p324_p3 = scmp.lt.s32.totalorder %s318_s9, %s318_s9 }
  0x26   :  { %p325_p4 = por %p324_p3, %p323_p2 }
  0x28   :  { %p326_p5 = pnand %p325_p4, %p319_p1 }
  0x2a   :  { %329 = shalt.err (!%p326_p5)
}
  0x2b   :  { %75 = dma.hbm_to_vmem [thread:$0]  %s446_s3, 128, %s73_s6, [#allocation12]  }
  0x2c   :  { %370 = dma.done.wait [#allocation6], 128  }
  0x2d   :  { %371 = vsyncadd [#allocation6], 4294967168 }
  0x2e   :  { %372 = dma.done.wait [#allocation9], 256  }
  0x2f   :  { %373 = vsyncadd [#allocation9], 4294967040 }
  0x30   :  { %374 = dma.done.wait [#allocation12], 128  }
  0x31   :  { %375 = vsyncadd [#allocation12], 4294967168  ;;  %v110_v0 = vld [vmem:[#allocation10] sm:$0xff]  ;;  %v111_v1 = vld [vmem:[#allocation11] sm:$0xff]  ;;  %vm119_vm0 = vcmask 261120   ;;  %vm104_vm1 = vcmask 0  }
  0x32   :  { %v108_v2 = vld [vmem:[#allocation5] sm:$0xff]  ;;  %v116_v3 = vsub.f32 %v110_v0, %v111_v1  ;;  %v109_v4 = vld [vmem:[#allocation8] sm:$0xff]  ;;  %v384_v16 = vmov 0.0   ;;  %vm143_vm2 = vcmask 7168   ;;  %s385_s12 = smov [#allocation13]   ;;  %s386_s14 = smov [#allocation14]  }
  0x33   :  { %v114_v5 = vsub.f32 %v108_v2, %v110_v0  ;;  %v112_v6 = vsub.f32 %v108_v2, %v109_v4  ;;  %105 = vst.msk [vmem:[#allocation2] sm:$0x1] %vm104_vm1, %v384_v16  ;;  %106 = vst.msk [vmem:[#allocation3] sm:$0x1] %vm104_vm1, %v384_v16  ;;  %s203_s13 = sshll.u32 %s385_s12, 4  ;;  %s213_s15 = sshll.u32 %s386_s14, 4  ;;  %s204_s13 = int_to_ptr.vmem [resolvable:$true] %s203_s13  ;;  %s214_s15 = int_to_ptr.vmem [resolvable:$true] %s213_s15 }
  0x34   :  { %v117_v7 = vadd.f32 1e-06, %v116_v3  ;;  %107 = vst.msk [vmem:[#allocation4] sm:$0x1] %vm104_vm1, %v384_v16  ;;  %s330_s16 = scalar_lea.vmem %s204_s13, 16  ;;  %s334_s17 = scalar_lea.vmem %s204_s13, 32 }
  0x35   :  { %v115_v8 = vadd.f32 1e-06, %v114_v5  ;;  %v113_v9 = vadd.f32 1e-06, %v112_v6  ;;  %p331_p6 = scmp.ne.s32.totalorder %s204_s13, %s330_s16  ;;  %p335_p7 = scmp.lt.s32.totalorder %s204_s13, %s204_s13 }
  0x36   :  { %v127_v10 = vmul.f32 %v117_v7, %v117_v7  ;;  %p336_p8 = scmp.lt.s32.totalorder %s334_s17, %s330_s16 }
  0x37   :  { %v118_v11 = vmul.f32 %v113_v9, %v113_v9  ;;  %v123_v12 = vmul.f32 %v115_v8, %v115_v8 }
  0x38   :  { %v128_v13 = vsel %vm119_vm0, %v127_v10, 0.0  ;;  %p337_p9 = por %p336_p8, %p335_p7 }
  0x39   :  { %129 = vadd.xlane.f32.xlu1 %v128_v13  ;;  %v120_v14 = vsel %vm119_vm0, %v118_v11, 0.0  ;;  %v124_v15 = vsel %vm119_vm0, %v123_v12, 0.0 }
  0x3a   :  { %121 = vadd.xlane.f32.xlu0 %v120_v14  ;;  %v142_v51 = vld [vmem:[#allocation2] sm:$0x1]  ;;  %v158_v52 = vld [vmem:[#allocation3] sm:$0x1]  ;;  %p338_p10 = pnand %p337_p9, %p331_p6 }
  0x3b   :  { %v172_v57 = vld [vmem:[#allocation4] sm:$0x1] }
  0x3e   :  { %125 = vadd.xlane.f32.xlu0 %v124_v15 }
  0xc2   :  { %v130_v17 = vpop.xlane.xlu1 %129 }
  0xc3   :  { %v122_v18 = vpop.xlane.xlu0 %121 }
  0xc4   :  { %v134_v19 = vsub.f32 %v122_v18, %v130_v17  ;;  %vm138_vm4 = vcmp.lt.f32.partialorder %v122_v18, %v130_v17 }
  0xc6   :  { %v135_v20 = vadd.f32 1.0, %v134_v19 }
  0xc7   :  { %v126_v21 = vpop.xlane.xlu0 %125 }
  0xc8   :  { %v131_v22 = vsub.f32 %v122_v18, %v126_v21  ;;  %v136_v23 = vmax.f32 %v135_v20, 0.0  ;;  %vm137_vm3 = vcmp.lt.f32.partialorder %v122_v18, %v126_v21 }
  0xc9   :  { %vm139_vm5 = vmand %vm137_vm3, %vm138_vm4 }
  0xca   :  { %v132_v24 = vadd.f32 2.0, %v131_v22  ;;  %v159_v25 = vsel %vm143_vm2, %v136_v23, 0.0  ;;  %v236_v28 = vsel %vm139_vm5, 1.0, %v384_v16 }
  0xcb   :  { %160 = vadd.xlane.f32.xlu0 %v159_v25  ;;  %v173_v29 = vsel %vm143_vm2, %v236_v28, 0.0 }
  0xcc   :  { %v133_v26 = vmax.f32 %v132_v24, 0.0 }
  0xce   :  { %v144_v27 = vsel %vm143_vm2, %v133_v26, 0.0 }
  0xcf   :  { %145 = vadd.xlane.f32.xlu1 %v144_v27 }
  0xd3   :  { %174 = vadd.xlane.f32.xlu1 %v173_v29 }
 0x154   :  { %v161_v30 = vpop.xlane.xlu0 %160 }
 0x155   :  { %v162_v31 = vrot.slane %v161_v30, 4 }
 0x157   :  { %v163_v32 = vadd.f32 %v162_v31, %v161_v30 }
 0x158   :  { %v146_v33 = vpop.xlane.xlu1 %145 }
 0x159   :  { %v164_v34 = vrot.slane %v163_v32, 2  ;;  %v147_v35 = vrot.slane %v146_v33, 4 }
 0x15b   :  { %v148_v36 = vadd.f32 %v147_v35, %v146_v33  ;;  %v165_v37 = vadd.f32 %v164_v34, %v163_v32 }
 0x15c   :  { %v175_v38 = vpop.xlane.xlu1 %174 }
 0x15d   :  { %v149_v39 = vrot.slane %v148_v36, 2  ;;  %v176_v40 = vrot.slane %v175_v38, 4  ;;  %v166_v43 = vrot.slane %v165_v37, 1 }
 0x15f   :  { %v177_v41 = vadd.f32 %v176_v40, %v175_v38  ;;  %v150_v42 = vadd.f32 %v149_v39, %v148_v36  ;;  %v167_v48 = vadd.f32 %v166_v43, %v165_v37 }
 0x161   :  { %v178_v44 = vrot.slane %v177_v41, 2  ;;  %v151_v45 = vrot.slane %v150_v42, 1 }
 0x163   :  { %v179_v46 = vadd.f32 %v178_v44, %v177_v41  ;;  %v152_v47 = vadd.f32 %v151_v45, %v150_v42 }
 0x165   :  { %237 = vpush %v152_v47  ;;  %v180_v49 = vrot.slane %v179_v46, 1 }
 0x166   :  { %239 = vpush %v167_v48 }
 0x167   :  { %v181_v50 = vadd.f32 %v180_v49, %v179_v46 }
 0x169   :  { %241 = vpush %v181_v50 }
 0x196   :  { %s238_s2 = spop %237 }
 0x197   :  { %v154_v53 = vstv %s238_s2  ;;  %s240_s3 = spop %239 }
 0x198   :  { %v155_v54 = vadd.f32 %v154_v53, %v142_v51  ;;  %v169_v55 = vstv %s240_s3 }
 0x199   :  { %v170_v56 = vadd.f32 %v169_v55, %v158_v52 }
 0x19a   :  { %157 = vst.msk [vmem:[#allocation2] sm:$0x1] %vm104_vm1, %v155_v54  ;;  %s242_s11 = spop %241 }
 0x19b   :  { %171 = vst.msk [vmem:[#allocation3] sm:$0x1] %vm104_vm1, %v170_v56  ;;  %v183_v58 = vstv %s242_s11 }
 0x19c   :  { %v184_v59 = vadd.f32 %v183_v58, %v172_v57 }
 0x19e   :  { %185 = vst.msk [vmem:[#allocation4] sm:$0x1] %vm104_vm1, %v184_v59 }
 0x1a1   :  { %v189_v60 = vld [vmem:[#allocation2] sm:$0x1] }
 0x1a2   :  { %v190_v61 = vld [vmem:[#allocation3] sm:$0x1] }
 0x1a3   :  { %v191_v62 = vadd.f32 %v190_v61, %v189_v60 }
 0x1a5   :  { %v192_v63 = vmul.f32 0.125, %v191_v62  ;;  %v194_v0 = vld [vmem:[#allocation4] sm:$0x1] }
 0x1a6   :  { %v195_v1 = vmul.f32 0.125, %v194_v0 }
 0x1a7   :  { %193 = vst.msk [vmem:[#allocation13] sm:$0x1] %vm104_vm1, %v192_v63 }
 0x1a8   :  { %341 = shalt.err (!%p338_p10)
}
 0x1a9   :  { %206 = dma.vmem_to_hbm [thread:$0]  %s204_s13, 16, %s447_s4, [#allocation7]   ;;  %196 = vst.msk [vmem:[#allocation14] sm:$0x1] %vm104_vm1, %v195_v1 }
 0x1aa   :  { %s350_s20 = scalar_lea.vmem %s214_s15, 16  ;;  %s354_s21 = scalar_lea.vmem %s214_s15, 32 }
 0x1ab   :  { %p351_p11 = scmp.ne.s32.totalorder %s214_s15, %s350_s20  ;;  %p355_p12 = scmp.lt.s32.totalorder %s214_s15, %s214_s15 }
 0x1ac   :  { %p356_p13 = scmp.lt.s32.totalorder %s354_s21, %s350_s20 }
 0x1ae   :  { %p357_p0 = por %p356_p13, %p355_p12 }
 0x1b0   :  { %p358_p1 = pnand %p357_p0, %p351_p11 }
 0x1b2   :  { %361 = shalt.err (!%p358_p1)
}
 0x1b3   :  { %216 = dma.vmem_to_hbm [thread:$0]  %s214_s15, 16, %s448_s5, [#allocation15]  }
 0x1b4   :  { %376 = dma.done.wait [#allocation7], 16  }
 0x1b5   :  { %377 = vsyncadd [#allocation7], 4294967280 }
 0x1b6   :  { %378 = dma.done.wait [#allocation15], 16  }
 0x1b7   :  { %379 = vsyncadd [#allocation15], 4294967280 }
 0x1b8   :  { %223 = vsyncpa [#allocation6], 1 }
 0x1b9   :  { %224 = vsyncpa [#allocation9], 1 }
 0x1ba   :  { %225 = vsyncpa [#allocation12], 1 }
 0x1bb   :  { %226 = vsyncpa [#allocation7], 1 }
 0x1bc   :  { %227 = vsyncpa [#allocation15], 1 }

</bundles_post_ra>
